<compile_context>
chip_gen: v7x
topology: tpu7x:2x2x1
jax: 0.10.0
libtpu: 0.0.40
codegen_flags: <defaults>
</compile_context>

<pallas_src>
import functools
import random

import numpy as np
import jax
import jax.numpy as jnp
from jax.experimental import pallas as pl
from jax.experimental.pallas import tpu as pltpu


_VMEM_LIMIT = 32 * 1024 * 1024   # safe on v5e/v6e (128 MiB phys) and v7x (64 MiB)


# ---------------------------------------------------------------------------
# Kernel (specialized on add_noise / do_blur via functools.partial)
# ---------------------------------------------------------------------------
def _aug_kernel(fparams_ref, x_ref, *rest, add_noise, do_blur):
    # arg layout: fparams (SMEM), x (TM, HW), [noise (TM, HW)], [B2^T (HW, HW)], out
    idx = 0
    noise_ref = None
    if add_noise:
        noise_ref = rest[idx]; idx += 1
    b2t_ref = None
    if do_blur:
        b2t_ref = rest[idx]; idx += 1
    o_ref = rest[idx]

    x = x_ref[...].astype(jnp.float32)                    # (TM, HW) lane-dense
    # brightness
    x = x * fparams_ref[0]
    # contrast: per-(n, c) spatial mean == per-row mean on the flattened layout
    mean = jnp.mean(x, axis=-1, keepdims=True)
    x = (x - mean) * fparams_ref[1] + mean
    # gaussian noise (host-generated standard normals, scaled by noise_std)
    if add_noise:
        x = x + noise_ref[...].astype(jnp.float32) * fparams_ref[2]
    # 5x5 reflect-pad gaussian blur as a single lane-dense MXU matmul
    if do_blur:
        x = jnp.dot(x.astype(jnp.bfloat16), b2t_ref[...],
                    preferred_element_type=jnp.float32)
    o_ref[...] = jnp.clip(x, 0.0, 1.0).astype(o_ref.dtype)


# ---------------------------------------------------------------------------
# pallas_call wrapper
# ---------------------------------------------------------------------------
def _choose_tm(rows, hw, itemsize, target_bytes=2 << 20):
    """Largest multiple-of-8 row tile with one block <= ~2 MiB (v7x-safe with
    double buffering + aliased output); prefer >=2 grid steps for 2-TC chips."""
    tm = max(8, (target_bytes // max(1, hw * itemsize)) // 8 * 8)
    tm = min(tm, rows)
    if tm == rows and rows >= 16:
        tm = max(8, (rows // 2) // 8 * 8)      # give v7x's two TCs work
    if tm != rows:
        tm = max(8, tm // 8 * 8)
    return tm


def _aug_pallas(xf, fparams, noise, b2t, add_noise, do_blur):
    rows, hw = xf.shape
    tm = _choose_tm(rows, hw, xf.dtype.itemsize)
    grid = (pl.cdiv(rows, tm),)
    row_spec = pl.BlockSpec((tm, hw), lambda i: (i, 0))

    in_specs = [pl.BlockSpec(memory_space=pltpu.MemorySpace.SMEM),  # fparams
                row_spec]                                            # x
    args = [fparams, xf]
    if add_noise:
        in_specs.append(row_spec)
        args.append(noise)
    if do_blur:
        in_specs.append(pl.BlockSpec((hw, hw), lambda i: (0, 0)))   # B2^T, resident
        args.append(b2t)

    flops = (8 + (2 * hw if do_blur else 0)) * xf.size
    bytes_accessed = ((2 + (1 if add_noise else 0)) * xf.size * xf.dtype.itemsize
                      + (hw * hw * 2 if do_blur else 0))

    kernel = functools.partial(_aug_kernel, add_noise=add_noise, do_blur=do_blur)
    return pl.pallas_call(
        kernel,
        out_shape=jax.ShapeDtypeStruct(xf.shape, xf.dtype),
        grid=grid,
        in_specs=in_specs,
        out_specs=row_spec,
        input_output_aliases={1: 0},     # reuse x's HBM buffer (donate x upstream)
        compiler_params=pltpu.CompilerParams(
            dimension_semantics=("parallel",),
            vmem_limit_bytes=_VMEM_LIMIT),
        cost_estimate=pl.CostEstimate(
            flops=flops, transcendentals=0, bytes_accessed=bytes_accessed),
    )(*args)


# ---------------------------------------------------------------------------
# Host-side glue: blur operator construction + RNG gating (mirrors forward())
# ---------------------------------------------------------------------------
def _gaussian_blur_matrix(n, sigma, ksize=5):
    """Dense (n, n) matrix == 1-D gaussian blur (kernel_size=5) with 'reflect'
    padding, matching torchvision TF.gaussian_blur."""
    half = (ksize - 1) * 0.5
    xs = np.linspace(-half, half, ksize)
    pdf = np.exp(-0.5 * (xs / sigma) ** 2)
    k1d = (pdf / pdf.sum()).astype(np.float64)
    r = ksize // 2
    B = np.zeros((n, n), dtype=np.float64)
    for i in range(n):
        for t in range(-r, r + 1):
            j = i + t
            if j < 0:
                j = -j                      # reflect (no edge repeat)
            elif j >= n:
                j = 2 * n - 2 - j
            j = min(max(j, 0), n - 1)       # guard degenerate tiny n
            B[i, j] += k1d[t + r]
    return B.astype(np.float32)


def microscopy_augmentation(
    x,
    seed=0,
    brightness_range=(0.8, 1.2),
    contrast_range=(0.8, 1.2),
    noise_std=0.02,
    blur_sigma_range=(0.0, 1.0),
    p=0.5,
    gates=None,
):
    """Faithful port of MicroscopyAugmentation.forward (float inputs in [0,1]).

    `gates` (optional) overrides the random draws for deterministic testing:
        dict(apply=bool, brightness=float|None, contrast=float|None,
             noise=bool, sigma=float)
    """
    if gates is None:
        rng = random.Random(seed)
        if rng.random() > p:
            return x                                   # no clamp, as in PyTorch
        brightness = rng.uniform(*brightness_range) if rng.random() < 0.5 else None
        contrast = rng.uniform(*contrast_range) if rng.random() < 0.5 else None
        add_noise = rng.random() < 0.3
        sigma = rng.uniform(*blur_sigma_range) if rng.random() < 0.3 else 0.0
    else:
        if not gates.get("apply", True):
            return x
        brightness = gates.get("brightness", None)
        contrast = gates.get("contrast", None)
        add_noise = bool(gates.get("noise", False))
        sigma = float(gates.get("sigma", 0.0))

    N, C, H, W = x.shape
    rows, hw = N * C, H * W
    xf = x.reshape(rows, hw)                               # lane-dense layout
    fparams = jnp.array(
        [1.0 if brightness is None else brightness,
         1.0 if contrast is None else contrast,
         float(noise_std)], dtype=jnp.float32)

    noise = None
    if add_noise:
        # torch.randn_like equivalent (not bit-exact), host-generated so it is
        # tiling-invariant and needs no in-kernel hardware PRNG.
        noise = jax.random.normal(jax.random.PRNGKey(int(seed) & 0x7FFFFFFF),
                                  (rows, hw), dtype=jnp.float32)

    b2t = None
    do_blur = sigma > 0.0
    if do_blur:
        # TODO(synk): kron operator is O((H*W)^2); large images need a separable-blur kernel.
        bh = _gaussian_blur_matrix(H, sigma)
        bw = _gaussian_blur_matrix(W, sigma)
        b2t = jnp.asarray(np.kron(bh, bw).T).astype(jnp.bfloat16)  # (HW, HW)

    out = _aug_pallas(xf, fparams, noise, b2t, add_noise, do_blur)
    return out.reshape(N, C, H, W)


# ---------------------------------------------------------------------------
if __name__ == "__main__":
    N, C, H, W = 2, 4, 16, 16
    key = jax.random.PRNGKey(0)
    k1, k2, k3 = jax.random.split(key, 3)

    def make_input(k):
        # microscopy-like intensities in [0, 1]
        return jax.random.uniform(k, (N, C, H, W), dtype=jnp.float32)

    # Path 1: all branches on -> blur-specialized kernel (kron operator matmul).
    x1 = make_input(k1)
    out1 = jax.block_until_ready(microscopy_augmentation(
        x1, seed=0,
        gates=dict(apply=True, brightness=1.1, contrast=0.9, noise=True, sigma=0.7)))

    # Path 2: brightness/contrast only -> pure elementwise row-tiled kernel.
    x2 = make_input(k2)
    out2 = jax.block_until_ready(microscopy_augmentation(
        x2, seed=0,
        gates=dict(apply=True, brightness=1.15, contrast=1.1, noise=False, sigma=0.0)))

    # Path 3: host RNG gating exactly like the PyTorch forward()
    # (seed=1 passes the p-gate and enables only the noise branch).
    x3 = make_input(k3)
    out3 = jax.block_until_ready(microscopy_augmentation(x3, seed=1))

    for o in (out1, out2, out3):
        assert o.shape == (N, C, H, W) and o.dtype == jnp.float32
        assert bool(jnp.all(jnp.isfinite(o)))
        assert float(jnp.min(o)) >= 0.0 and float(jnp.max(o)) <= 1.0

    # Numerical reference for the deterministic brightness/contrast path.
    xb = np.asarray(x2, dtype=np.float32) * 1.15
    m = xb.mean(axis=(-2, -1), keepdims=True)
    ref2 = np.clip((xb - m) * 1.1 + m, 0.0, 1.0)
    assert float(np.max(np.abs(np.asarray(out2) - ref2))) < 1e-5

    # Numerical reference for the full path (separable reflect-pad blur in f64/f32
    # numpy; kernel matmul uses bf16 operands -> loose tolerance).
    def ref_blur_np(img, sigma):                           # img: (C, H, W)
        Bh = _gaussian_blur_matrix(H, sigma)
        Bw = _gaussian_blur_matrix(W, sigma)
        return np.einsum("ij,cjk,lk->cil", Bh, img, Bw)

    noise1 = np.asarray(
        jax.random.normal(jax.random.PRNGKey(0), (N * C, H * W), dtype=jnp.float32)
    ).reshape(N, C, H, W)
    t = np.asarray(x1, dtype=np.float32) * 1.1
    m1 = t.mean(axis=(-2, -1), keepdims=True)
    t = (t - m1) * 0.9 + m1
    t = t + noise1 * 0.02
    t = np.stack([ref_blur_np(t[n], 0.7) for n in range(N)])
    ref1 = np.clip(t, 0.0, 1.0)
    assert float(np.max(np.abs(np.asarray(out1) - ref1))) < 5e-2

    print("KERNEL_OK")
</pallas_src>

<mosaic_0001>
module attributes {stable_mosaic.version = 11 : i64} {
  func.func @_aug_kernel(%arg0: i32, %arg1: memref<3xf32, #tpu.memory_space<smem>>, %arg2: memref<8x256xf32, #tpu.memory_space<vmem>>, %arg3: memref<8x256xf32, #tpu.memory_space<vmem>>, %arg4: memref<256x256xbf16, #tpu.memory_space<vmem>>, %arg5: memref<8x256xf32, #tpu.memory_space<vmem>>) attributes {dimension_semantics = [#tpu.dimension_semantics<parallel>], iteration_bounds = array<i64: 1>, scalar_prefetch = 0 : i64, scratch_operands = 0 : i64, tpu.core_type = #tpu.core_type<tc>, window_params = [{transform_indices = @transform_0, window_bounds = array<i64: 3>}, {transform_indices = @transform_1, window_bounds = array<i64: 8, 256>}, {transform_indices = @transform_2, window_bounds = array<i64: 8, 256>}, {pipeline_mode = #tpu.pipeline_mode<synchronous>, transform_indices = @transform_3, window_bounds = array<i64: 256, 256>}, {transform_indices = @transform_4, window_bounds = array<i64: 8, 256>}]} {
    %c0 = arith.constant 0 : index
    %c0_0 = arith.constant 0 : index
    %0 = vector.load %arg2[%c0, %c0_0] : memref<8x256xf32, #tpu.memory_space<vmem>>, vector<8x256xf32>
    %c0_1 = arith.constant 0 : index
    %1 = memref.load %arg1[%c0_1] : memref<3xf32, #tpu.memory_space<smem>>
    %2 = vector.broadcast %1 : f32 to vector<8x256xf32>
    %3 = arith.mulf %0, %2 : vector<8x256xf32>
    %cst = arith.constant dense<0.000000e+00> : vector<8xf32>
    %4 = vector.multi_reduction <add>, %3, %cst [1] : vector<8x256xf32> to vector<8xf32>
    %5 = vector.shape_cast %4 : vector<8xf32> to vector<8x1xf32>
    %cst_2 = arith.constant 2.560000e+02 : f32
    %6 = vector.broadcast %cst_2 : f32 to vector<8x1xf32>
    %7 = arith.divf %5, %6 : vector<8x1xf32>
    %8 = vector.broadcast %7 : vector<8x1xf32> to vector<8x256xf32>
    %9 = arith.subf %3, %8 : vector<8x256xf32>
    %c1 = arith.constant 1 : index
    %10 = memref.load %arg1[%c1] : memref<3xf32, #tpu.memory_space<smem>>
    %11 = vector.broadcast %10 : f32 to vector<8x256xf32>
    %12 = arith.mulf %9, %11 : vector<8x256xf32>
    %13 = vector.broadcast %7 : vector<8x1xf32> to vector<8x256xf32>
    %14 = arith.addf %12, %13 : vector<8x256xf32>
    %c0_3 = arith.constant 0 : index
    %c0_4 = arith.constant 0 : index
    %15 = vector.load %arg3[%c0_3, %c0_4] : memref<8x256xf32, #tpu.memory_space<vmem>>, vector<8x256xf32>
    %c2 = arith.constant 2 : index
    %16 = memref.load %arg1[%c2] : memref<3xf32, #tpu.memory_space<smem>>
    %17 = vector.broadcast %16 : f32 to vector<8x256xf32>
    %18 = arith.mulf %15, %17 : vector<8x256xf32>
    %19 = arith.addf %14, %18 : vector<8x256xf32>
    %20 = arith.truncf %19 : vector<8x256xf32> to vector<8x256xbf16>
    %c0_5 = arith.constant 0 : index
    %c0_6 = arith.constant 0 : index
    %21 = vector.load %arg4[%c0_5, %c0_6] : memref<256x256xbf16, #tpu.memory_space<vmem>>, vector<256x256xbf16>
    %cst_7 = arith.constant dense<0.000000e+00> : vector<8x256xf32>
    %22 = tpu.matmul %20, %21, %cst_7 {dimension_numbers = #tpu.dot_dimension_numbers<[1], [0], [0], [1], [0, 0, 1, 1], [], []>} : vector<8x256xbf16>, vector<256x256xbf16>, vector<8x256xf32> -> vector<8x256xf32>
    %cst_8 = arith.constant 0.000000e+00 : f32
    %cst_9 = arith.constant 1.000000e+00 : f32
    %23 = vector.broadcast %cst_8 : f32 to vector<8x256xf32>
    %24 = arith.maximumf %23, %22 : vector<8x256xf32>
    %25 = vector.broadcast %cst_9 : f32 to vector<8x256xf32>
    %26 = arith.minimumf %25, %24 : vector<8x256xf32>
    %c0_10 = arith.constant 0 : index
    %c0_11 = arith.constant 0 : index
    %27 = vector.load %arg5[%c0_10, %c0_11] : memref<8x256xf32, #tpu.memory_space<vmem>>, vector<8x256xf32>
    tpu.vector_store %arg5[%c0_10, %c0_11], %26 {strides = array<i32>} : memref<8x256xf32, #tpu.memory_space<vmem>>, vector<8x256xf32>,
    return
  }
  func.func @transform_0(%arg0: i32) -> i32 {
    %c0_i32 = arith.constant 0 : i32
    %c0_i32_0 = arith.constant 0 : i32
    return %c0_i32 : i32
  }
  func.func @transform_1(%arg0: i32) -> (i32, i32) {
    %c0_i32 = arith.constant 0 : i32
    %c0_i32_0 = arith.constant 0 : i32
    return %arg0, %c0_i32 : i32, i32
  }
  func.func @transform_2(%arg0: i32) -> (i32, i32) {
    %c0_i32 = arith.constant 0 : i32
    %c0_i32_0 = arith.constant 0 : i32
    return %arg0, %c0_i32 : i32, i32
  }
  func.func @transform_3(%arg0: i32) -> (i32, i32) {
    %c0_i32 = arith.constant 0 : i32
    %c0_i32_0 = arith.constant 0 : i32
    %c0_i32_1 = arith.constant 0 : i32
    return %c0_i32, %c0_i32_0 : i32, i32
  }
  func.func @transform_4(%arg0: i32) -> (i32, i32) {
    %c0_i32 = arith.constant 0 : i32
    %c0_i32_0 = arith.constant 0 : i32
    return %arg0, %c0_i32 : i32, i32
  }
}

</mosaic_0001>

<bundles_post_ra>
// kernel: tpu_custom_call.1
= control target key start
LH: loop header
LB: loop body
LE: loop exit
PB: predicated region body
PF: predicated region fallthrough
CT: control target
= control target key end

     0   :  { %9 = vsyncpa [#allocation5], 0  ;;  %s600_s0 = inlined_call_operand.vmem [shape: f32[3], index: 0, kind: input, shape index: {}]   ;;  %s601_s1 = inlined_call_operand.hbm [shape: f32[8,256], index: 1, kind: input, shape index: {}, may-alias: {1,4}]   ;;  %s602_s2 = inlined_call_operand.vmem [shape: f32[8,256], index: 2, kind: input, shape index: {}]   ;;  %s603_s3 = inlined_call_operand.hbm [shape: bf16[256,256], index: 3, kind: input, shape index: {}]   ;;  %s604_s4 = inlined_call_operand.hbm [shape: f32[8,256], index: 4, kind: output, shape index: {}, may-alias: {1,4}]  }
   0x1   :  { %10 = vsyncpa [#allocation3], 0 }
   0x2   :  { %11 = vsyncpa [#allocation8], 0 }
   0x3   :  { %12 = vsyncpa [#allocation4], 0  ;;  %s19_s17 = sshll.u32 %s600_s0, 4  ;;  %s20_s17 = int_to_ptr.vmem [resolvable:$true] %s19_s17 }
   0x4   :  { %s430_s18 = scalar_lea.vmem %s20_s17, 16  ;;  %p435_p1 = scmp.lt.s32.totalorder %s20_s17, %s20_s17 }
   0x5   :  { %p431_p0 = scmp.ne.s32.totalorder %s20_s17, %s430_s18  ;;  %p436_p2 = scmp.lt.s32.totalorder %s430_s18, %s430_s18 }
   0x7   :  { %p437_p3 = por %p436_p2, %p435_p1 }
   0x9   :  { %p438_p4 = pnand %p437_p3, %p431_p0 }
   0xb   :  { %441 = shalt.err (!%p438_p4)
}
   0xc   :  { %s516_s19 = smov [#allocation2]   ;;  %s517_s20 = smov [#allocation6]  }
   0xd   :  { %22 = dma.vmem_to_smem %s20_s17, 16, %s516_s19, [#allocation5]  }
   0xe   :  { %s29_s21 = sshll.u32 %s517_s20, 4  ;;  %s518_s22 = smov [#allocation7]   ;;  %s30_s21 = int_to_ptr.vmem [resolvable:$true] %s29_s21 }
   0xf   :  { %s40_s23 = sshll.u32 %s518_s22, 4  ;;  %s442_s26 = scalar_lea.hbm %s601_s1, 256  ;;  %s41_s23 = int_to_ptr.vmem [resolvable:$true] %s40_s23 }
  0x10   :  { %p443_p5 = scmp.ne.s32.totalorder %s601_s1, %s442_s26  ;;  %p446_p6 = scmp.lt.u32.totalorder %s442_s26, %s601_s1 }
  0x12   :  { %p448_p7 = pnand %p446_p6, %p443_p5 }
  0x14   :  { %451 = shalt.err (!%p448_p7)
}
  0x15   :  { %s452_s30 = scalar_lea.vmem %s30_s21, 256  ;;  %p457_p9 = scmp.lt.s32.totalorder %s30_s21, %s30_s21 }
  0x16   :  { %p453_p8 = scmp.ne.s32.totalorder %s30_s21, %s452_s30  ;;  %p458_p10 = scmp.lt.s32.totalorder %s452_s30, %s452_s30 }
  0x18   :  { %p459_p11 = por %p458_p10, %p457_p9 }
  0x1a   :  { %p460_p12 = pnand %p459_p11, %p453_p8 }
  0x1c   :  { %463 = shalt.err (!%p460_p12)
}
  0x1d   :  { %32 = dma.hbm_to_vmem [thread:$0]  %s601_s1, 256, %s30_s21, [#allocation3]  }
  0x1e   :  { %s464_s9 = scalar_lea.hbm %s603_s3, 4096 }
  0x1f   :  { %p465_p13 = scmp.ne.s32.totalorder %s603_s3, %s464_s9  ;;  %p468_p0 = scmp.lt.u32.totalorder %s464_s9, %s603_s3 }
  0x21   :  { %p470_p1 = pnand %p468_p0, %p465_p13 }
  0x23   :  { %473 = shalt.err (!%p470_p1)
}
  0x24   :  { %s474_s14 = scalar_lea.vmem %s41_s23, 4096  ;;  %p479_p3 = scmp.lt.s32.totalorder %s41_s23, %s41_s23 }
  0x25   :  { %p475_p2 = scmp.ne.s32.totalorder %s41_s23, %s474_s14  ;;  %p480_p4 = scmp.lt.s32.totalorder %s474_s14, %s474_s14 }
  0x27   :  { %p481_p5 = por %p480_p4, %p479_p3 }
  0x29   :  { %p482_p6 = pnand %p481_p5, %p475_p2 }
  0x2b   :  { %485 = shalt.err (!%p482_p6)
}
  0x2c   :  { %s519_s1 = smov 128   ;;  %s520_s15 = smov 8  }
  0x2d   :  { %46 = dma.hbm_to_vmem [thread:$0]  %s603_s3, 4096, %s41_s23, [#allocation8], %s519_s1, %s519_s1, %s520_s15  }
  0x2e   :  { %508 = dma.done.wait [#allocation5], 16  }
  0x2f   :  { %509 = vsyncadd [#allocation5], 4294967280 }
  0x30   :  { %510 = dma.done.wait [#allocation3], 256  }
  0x31   :  { %511 = vsyncadd [#allocation3], 4294967040 }
  0x32   :  { %512 = dma.done.wait [#allocation8], 4096  }
  0x33   :  { %513 = vsyncadd [#allocation8], 4294963200 }
  0x34   :  { %56 = sfence }
  0x35   :  { %s59_s18 = sld [smem:[#allocation2]]  ;;  %v382_v0 = vld [vmem:[#allocation7 + $0x4] ss:$8 sps:$4 sm:$0xff]   ;;  %v384_v1 = vld [vmem:[#allocation7] ss:$8 sps:$4 sm:$0xff]   ;;  %v57_v3 = vld [vmem:[#allocation6] sm:$0xff] }
  0x36   :  { %v385_v2 = vld [vmem:[#allocation7 + $0x14] ss:$8 sps:$4 sm:$0xff]   ;;  %278 = vmatprep.subr.bf16.mxu0 %v382_v0  ;;  %v387_v5 = vld [vmem:[#allocation7 + $0x10] ss:$8 sps:$4 sm:$0xff]   ;;  %v388_v6 = vld [vmem:[#allocation7 + $0x24] ss:$8 sps:$4 sm:$0xff]  }
  0x37   :  { %v58_v4 = vld [vmem:[#allocation6 + $0x8] sm:$0xff]  ;;  %279 = vmatpush1.bf16.msra.mxu0 %v384_v1  ;;  %v390_v10 = vld [vmem:[#allocation7 + $0x20] ss:$8 sps:$4 sm:$0xff]   ;;  %v394_v14 = vld [vmem:[#allocation7 + $0x44] ss:$8 sps:$4 sm:$0xff]   ;;  %s342_s3 = sld [smem:[#allocation2 + $0x1]] }
  0x38   :  { %280 = vmatprep.subr.bf16.mxu0 %v385_v2  ;;  %v391_v12 = vld [vmem:[#allocation7 + $0x34] ss:$8 sps:$4 sm:$0xff]   ;;  %v393_v13 = vld [vmem:[#allocation7 + $0x30] ss:$8 sps:$4 sm:$0xff]   ;;  %v396_v15 = vld [vmem:[#allocation7 + $0x40] ss:$8 sps:$4 sm:$0xff]  }
  0x39   :  { %v397_v16 = vld [vmem:[#allocation7 + $0x54] ss:$8 sps:$4 sm:$0xff]   ;;  %v399_v17 = vld [vmem:[#allocation7 + $0x50] ss:$8 sps:$4 sm:$0xff]   ;;  %v400_v18 = vld [vmem:[#allocation7 + $0x64] ss:$8 sps:$4 sm:$0xff]  }
  0x3a   :  { %v402_v19 = vld [vmem:[#allocation7 + $0x60] ss:$8 sps:$4 sm:$0xff]   ;;  %v403_v20 = vld [vmem:[#allocation7 + $0x74] ss:$8 sps:$4 sm:$0xff]   ;;  %v405_v21 = vld [vmem:[#allocation7 + $0x70] ss:$8 sps:$4 sm:$0xff]  }
  0x3b   :  { %v60_v7 = vstv %s59_s18  ;;  %281 = vmatpush1.bf16.msra.mxu0 %v387_v5  ;;  %v406_v22 = vld [vmem:[#allocation7 + $0x84] ss:$8 sps:$4 sm:$0xff]   ;;  %v408_v23 = vld [vmem:[#allocation7 + $0x80] ss:$8 sps:$4 sm:$0xff]   ;;  %v409_v24 = vld [vmem:[#allocation7 + $0x94] ss:$8 sps:$4 sm:$0xff]  }
  0x3c   :  { %v574_v8 = vmul.f32 %v60_v7, %v57_v3  ;;  %v576_v9 = vmul.f32 %v60_v7, %v58_v4  ;;  %282 = vmatprep.subr.bf16.mxu0 %v388_v6  ;;  %v411_v25 = vld [vmem:[#allocation7 + $0x90] ss:$8 sps:$4 sm:$0xff]   ;;  %v412_v26 = vld [vmem:[#allocation7 + $0xa4] ss:$8 sps:$4 sm:$0xff]   ;;  %v414_v27 = vld [vmem:[#allocation7 + $0xa0] ss:$8 sps:$4 sm:$0xff]  }
  0x3d   :  { %v415_v28 = vld [vmem:[#allocation7 + $0xb4] ss:$8 sps:$4 sm:$0xff]   ;;  %v417_v29 = vld [vmem:[#allocation7 + $0xb0] ss:$8 sps:$4 sm:$0xff]   ;;  %v418_v30 = vld [vmem:[#allocation7 + $0xc4] ss:$8 sps:$4 sm:$0xff]   ;;  %v71_v40 = vstv %s342_s3 }
  0x3e   :  { %v63_v11 = vadd.f32 %v576_v9, %v574_v8  ;;  %v420_v31 = vld [vmem:[#allocation7 + $0xc0] ss:$8 sps:$4 sm:$0xff]   ;;  %v421_v32 = vld [vmem:[#allocation7 + $0xd4] ss:$8 sps:$4 sm:$0xff]   ;;  %v423_v33 = vld [vmem:[#allocation7 + $0xd0] ss:$8 sps:$4 sm:$0xff]  }
  0x3f   :  { %283 = vmatpush1.bf16.msra.mxu0 %v390_v10  ;;  %v424_v34 = vld [vmem:[#allocation7 + $0xe4] ss:$8 sps:$4 sm:$0xff]   ;;  %v426_v35 = vld [vmem:[#allocation7 + $0xe0] ss:$8 sps:$4 sm:$0xff]   ;;  %v427_v36 = vld [vmem:[#allocation7 + $0xf4] ss:$8 sps:$4 sm:$0xff]  }
  0x40   :  { %64 = vadd.xlane.f32.xlu0 %v63_v11  ;;  %284 = vmatprep.subr.bf16.mxu0 %v391_v12  ;;  %v429_v37 = vld [vmem:[#allocation7 + $0xf0] ss:$8 sps:$4 sm:$0xff]   ;;  %s343_s19 = sld [smem:[#allocation2 + $0x2]] }
  0x41   :  { %v76_v41 = vld [vmem:[%s602_s2] sm:$0xff]  ;;  %v77_v42 = vld [vmem:[%s602_s2 + $0x8] sm:$0xff]  ;;  %s521_s2 = smov [#allocation9]  }
  0x42   :  { %s331_s24 = sshll.u32 %s521_s2, 4  ;;  %s332_s24 = int_to_ptr.vmem [resolvable:$true] %s331_s24 }
  0x43   :  { %285 = vmatpush1.bf16.msra.mxu0 %v393_v13  ;;  %s486_s25 = scalar_lea.vmem %s332_s24, 256  ;;  %p491_p8 = scmp.lt.s32.totalorder %s332_s24, %s332_s24 }
  0x44   :  { %286 = vmatprep.subr.bf16.mxu0 %v394_v14  ;;  %p487_p7 = scmp.ne.s32.totalorder %s332_s24, %s486_s25  ;;  %p492_p9 = scmp.lt.s32.totalorder %s486_s25, %s486_s25 }
  0x46   :  { %v79_v43 = vstv %s343_s19  ;;  %p493_p10 = por %p492_p9, %p491_p8 }
  0x47   :  { %287 = vmatpush1.bf16.msra.mxu0 %v396_v15  ;;  %v80_v48 = vmul.f32 %v79_v43, %v76_v41  ;;  %v81_v49 = vmul.f32 %v79_v43, %v77_v42 }
  0x48   :  { %288 = vmatprep.subr.bf16.mxu0 %v397_v16  ;;  %p494_p11 = pnand %p493_p10, %p487_p7 }
  0x4b   :  { %289 = vmatpush1.bf16.msra.mxu0 %v399_v17 }
  0x4c   :  { %290 = vmatprep.subr.bf16.mxu0 %v400_v18 }
  0x4f   :  { %291 = vmatpush1.bf16.msra.mxu0 %v402_v19 }
  0x50   :  { %292 = vmatprep.subr.bf16.mxu0 %v403_v20 }
  0x53   :  { %293 = vmatpush1.bf16.msra.mxu0 %v405_v21 }
  0x54   :  { %294 = vmatprep.subr.bf16.mxu0 %v406_v22 }
  0x57   :  { %295 = vmatpush1.bf16.msra.mxu0 %v408_v23 }
  0x58   :  { %296 = vmatprep.subr.bf16.mxu0 %v409_v24 }
  0x5b   :  { %297 = vmatpush1.bf16.msra.mxu0 %v411_v25 }
  0x5c   :  { %298 = vmatprep.subr.bf16.mxu0 %v412_v26 }
  0x5f   :  { %299 = vmatpush1.bf16.msra.mxu0 %v414_v27 }
  0x60   :  { %300 = vmatprep.subr.bf16.mxu0 %v415_v28 }
  0x63   :  { %301 = vmatpush1.bf16.msra.mxu0 %v417_v29 }
  0x64   :  { %302 = vmatprep.subr.bf16.mxu0 %v418_v30 }
  0x67   :  { %303 = vmatpush1.bf16.msra.mxu0 %v420_v31 }
  0x68   :  { %304 = vmatprep.subr.bf16.mxu0 %v421_v32 }
  0x6b   :  { %305 = vmatpush1.bf16.msra.mxu0 %v423_v33 }
  0x6c   :  { %306 = vmatprep.subr.bf16.mxu0 %v424_v34 }
  0x6f   :  { %307 = vmatpush1.bf16.msra.mxu0 %v426_v35 }
  0x70   :  { %308 = vmatprep.subr.bf16.mxu0 %v427_v36 }
  0x73   :  { %309 = vmatpush1.bf16.msra.mxu0 %v429_v37 }
  0xcd   :  { %v65_v38 = vpop.xlane.xlu0 %64 }
  0xce   :  { %v67_v39 = vmul.f32 0.00390625, %v65_v38 }
  0xd0   :  { %v68_v44 = vsub.f32 %v574_v8, %v67_v39  ;;  %v69_v45 = vsub.f32 %v576_v9, %v67_v39 }
  0xd2   :  { %v72_v46 = vmul.f32 %v71_v40, %v68_v44  ;;  %v73_v47 = vmul.f32 %v71_v40, %v69_v45 }
  0xd4   :  { %v75_v50 = vadd.f32 %v73_v47, %v67_v39  ;;  %v74_v51 = vadd.f32 %v72_v46, %v67_v39 }
  0xd6   :  { %v83_v52 = vadd.f32 %v81_v49, %v75_v50  ;;  %v82_v53 = vadd.f32 %v80_v48, %v74_v51 }
  0xd8   :  { %v85_v54 = vpack.c.bf16 %v83_v52, %v83_v52  ;;  %v84_v55 = vpack.c.bf16 %v82_v53, %v82_v53 }
  0xda   :  { %310 = vmatprep.mubr.bf16.mxu0 %v85_v54 }
  0xdb   :  { %311 = vmatmul.mubr.bf16.vlgmr.msra.gmra.mrb[0].mxu0 %v84_v55 }
 0x1ae   :  { %v312_v56 = vpop.f32.mrb[0].mxu0 }
 0x1af   :  { %v319_v57 = vmax.f32 %v312_v56, 0.0  ;;  %v314_v58 = vpop.f32.mrb[1].mxu0 }
 0x1b0   :  { %v320_v59 = vmax.f32 %v314_v58, 0.0  ;;  %v316_v60 = vpop.f32.mrb[2].mxu0 }
 0x1b1   :  { %v321_v61 = vmin.f32 %v319_v57, 1.0  ;;  %v317_v62 = vpop.f32.mrb[3].mxu0 }
 0x1b2   :  { %v322_v63 = vmin.f32 %v320_v59, 1.0 }
 0x1b3   :  { %323 = vst [vmem:[#allocation9] sm:$0xff] %v321_v61 }
 0x1b4   :  { %324 = vst [vmem:[#allocation9 + $0x8] sm:$0xff] %v322_v63 }
 0x1b5   :  { %497 = shalt.err (!%p494_p11)
}
 0x1b6   :  { %s498_s27 = scalar_lea.hbm %s604_s4, 256 }
 0x1b7   :  { %p499_p12 = scmp.ne.s32.totalorder %s604_s4, %s498_s27  ;;  %p502_p13 = scmp.lt.u32.totalorder %s498_s27, %s604_s4 }
 0x1b9   :  { %p504_p0 = pnand %p502_p13, %p499_p12 }
 0x1bb   :  { %507 = shalt.err (!%p504_p0)
}
 0x1bc   :  { %334 = dma.vmem_to_hbm [thread:$0]  %s332_s24, 256, %s604_s4, [#allocation4]  }
 0x1bd   :  { %514 = dma.done.wait [#allocation4], 256  }
 0x1be   :  { %515 = vsyncadd [#allocation4], 4294967040 }
 0x1bf   :  { %338 = vsyncpa [#allocation3], 1 }
 0x1c0   :  { %339 = vsyncpa [#allocation8], 1 }
 0x1c1   :  { %340 = vsyncpa [#allocation4], 1 }
 0x1c2   :  { %341 = vsyncpa [#allocation5], 1 }

</bundles_post_ra>
